<compile_context>
chip_gen: v6e
topology: v6e:2x2x1
jax: 0.10.0
libtpu: 0.0.40
codegen_flags: <defaults>
</compile_context>

<pallas_src>
import functools

import jax
import jax.numpy as jnp
from jax.experimental import pallas as pl
from jax.experimental.pallas import tpu as pltpu


def _round_up(x, m):
    return ((x + m - 1) // m) * m


def _vmem_capacity_bytes():
    """Per-generation VMEM capacity with a conservative fallback."""
    try:
        return int(pltpu.get_tpu_info().vmem_capacity_bytes)
    except Exception:
        return 64 * 1024 * 1024  # v7x per-core size: safe lower bound


def _primary_caps_kernel(p_ref, w_ref, m_ref, o_ref):
    """p_ref: (TP, CKKp) bf16     w_ref: (CKKp, NCOp) bf16 (bias row folded in)
       m_ref: (NCOp, NCOp) bf16   o_ref: (TP, NCOp) bf16"""
    # Fused per-capsule convolutions (+ bias via the ones column): one MXU GEMM.
    u = jnp.dot(p_ref[...], w_ref[...], preferred_element_type=jnp.float32)

    # Squash: sq[:, c*OC+oc] = sum_c' u[:, c'*OC+oc]^2, expressed as
    # (u*u) @ M with a constant 0/1 selection matrix so the capsule-axis
    # reduction stays lane-dense and runs on the MXU (bf16 in, f32 acc).
    sq = jnp.dot((u * u).astype(jnp.bfloat16), m_ref[...],
                 preferred_element_type=jnp.float32)
    scale = sq * pl.reciprocal(1.0 + sq, approx=True)   # EUP
    factor = scale * jax.lax.rsqrt(sq + 1e-9)           # EUP
    o_ref[...] = (u * factor).astype(o_ref.dtype)


def primary_caps_forward(x, weights, biases, *, kernel_size, stride,
                         padding=0, row_tile=None):
    """x: (B, C, H, W) f32; weights: (num_caps, OC, C, K, K); biases: (num_caps, OC).
       Returns (B, num_caps, OC*OH*OW) f32, matching the PyTorch module output."""
    B, C, H, W = x.shape
    num_caps, OC = weights.shape[0], weights.shape[1]
    K = kernel_size

    if padding:
        x = jnp.pad(x, ((0, 0), (0, 0), (padding, padding), (padding, padding)))
        H, W = H + 2 * padding, W + 2 * padding

    OH = (H - K) // stride + 1
    OW = (W - K) // stride + 1
    P = B * OH * OW
    CKK = C * K * K
    NCO = num_caps * OC

    # Reserve one extra K column for the folded bias; lane-align the output.
    CKKp = _round_up(CKK + 1, 128)
    # Full 256-wide MXU fill on v6e/v7x when NCO is large; 128 at small sizes.
    NCOp = _round_up(NCO, 256 if NCO >= 128 else 128)

    # ---- glue: im2col in bf16 end-to-end (no f32 patch matrix in HBM) ----
    # Channel ordering of dilated_patches: ic*K*K + kh*K + kw (channel-major).
    patches = jax.lax.conv_general_dilated_patches(
        x.astype(jnp.bfloat16), filter_shape=(K, K),
        window_strides=(stride, stride), padding="VALID",
        dimension_numbers=("NCHW", "OIHW", "NCHW"))       # (B, C*K*K, OH, OW)
    patches = patches.transpose(0, 2, 3, 1).reshape(P, CKK)
    # Bias ride-along column (1.0 for real rows; padded rows stay 0 => no bias).
    patches = jnp.concatenate(
        [patches, jnp.ones((P, 1), dtype=jnp.bfloat16)], axis=1)

    # ---- generation-aware VMEM budget / row tile (TP) ----
    cap = _vmem_capacity_bytes()
    vmem_limit = min(int(cap * 0.70), 100 * 1024 * 1024)
    budget = int(vmem_limit * 0.60)
    if row_tile is None:
        # Resident operands are single-buffered bf16; the streamed patch tile
        # and the bf16 output tile are double-buffered; in-kernel f32
        # temporaries (u, u^2, sq, scale, factor, ...) ~ 6 * TP * NCOp * 4 B.
        resident = CKKp * NCOp * 2 + NCOp * NCOp * 2
        per_row = CKKp * 2 * 2 + NCOp * 2 * 2 + 6 * NCOp * 4
        row_tile = max(16, min(512, (budget - resident) // per_row))
    TP = min(row_tile, _round_up(P, 16))
    TP = max(16, (TP // 16) * 16)          # bf16 sublane packing: multiple of 16
    Pp = _round_up(P, TP)

    # ---- pad + pack operands (bf16 MXU inputs, f32 accumulation in-kernel) ----
    patches = jnp.pad(patches, ((0, Pp - P), (0, CKKp - (CKK + 1))))

    # w_fused[k, c*OC + oc] = weights[c, oc, ic, kh, kw], k = ic*K*K + kh*K + kw.
    # Row CKK carries the biases (paired with the patches' ones column).
    w = weights.reshape(num_caps, OC, CKK).transpose(2, 0, 1).reshape(CKK, NCO)
    w = jnp.concatenate([w, biases.reshape(1, NCO)], axis=0)     # (CKK+1, NCO)
    w = jnp.pad(w, ((0, CKKp - (CKK + 1)), (0, NCOp - NCO))).astype(jnp.bfloat16)

    # Capsule-sum selection matrix: M[i, j] = 1 iff columns i, j are real and
    # share the same out_channel (i % OC == j % OC).  0/1 is exact in bf16.
    idx = jnp.arange(NCOp)
    m = ((idx[:, None] % OC) == (idx[None, :] % OC))
    m = m & (idx[:, None] < NCO) & (idx[None, :] < NCO)
    m = m.astype(jnp.bfloat16)

    out = pl.pallas_call(
        _primary_caps_kernel,
        out_shape=jax.ShapeDtypeStruct((Pp, NCOp), jnp.bfloat16),
        grid_spec=pltpu.PrefetchScalarGridSpec(
            num_scalar_prefetch=0,
            grid=(Pp // TP,),
            in_specs=[
                # streamed patch rows (only double-buffered operand)
                pl.BlockSpec((TP, CKKp), lambda i: (i, 0)),
                # resident fused weights: single buffer (constant index map)
                pl.BlockSpec((CKKp, NCOp), lambda i: (0, 0),
                             pipeline_mode=pl.Buffered(1)),
                # resident capsule-sum selection matrix: single buffer
                pl.BlockSpec((NCOp, NCOp), lambda i: (0, 0),
                             pipeline_mode=pl.Buffered(1)),
            ],
            out_specs=pl.BlockSpec((TP, NCOp), lambda i: (i, 0)),
        ),
        compiler_params=pltpu.CompilerParams(
            dimension_semantics=("parallel",),
            vmem_limit_bytes=vmem_limit),
    )(patches, w, m)

    # ---- glue: rearrange lane-dense (P, num_caps*OC) bf16 to the PyTorch
    #      layout (B, num_caps, OC*OH*OW); cast to f32 only at the very end.
    out = out[:P, :NCO].reshape(B, OH, OW, num_caps, OC)
    out = out.transpose(0, 3, 4, 1, 2)            # (B, num_caps, OC, OH, OW)
    return out.reshape(B, num_caps, OC * OH * OW).astype(jnp.float32)


def primary_caps_reference(x, weights, biases, *, kernel_size, stride, padding=0):
    """Pure-JAX f32 reference mirroring the PyTorch module semantics."""
    B = x.shape[0]
    num_caps = weights.shape[0]
    us = []
    for c in range(num_caps):
        y = jax.lax.conv_general_dilated(
            x, weights[c],
            window_strides=(stride, stride),
            padding=((padding, padding), (padding, padding)),
            dimension_numbers=("NCHW", "OIHW", "NCHW"),
            precision=jax.lax.Precision.HIGHEST)
        y = y + biases[c][None, :, None, None]
        us.append(y.reshape(B, -1, 1))
    u = jnp.concatenate(us, axis=2)                       # (B, N, num_caps)
    sn = jnp.sum(u * u, axis=2, keepdims=True)
    v = (sn / (1.0 + sn)) * u / jnp.sqrt(sn + 1e-9)
    return jnp.transpose(v, (0, 2, 1))                    # (B, num_caps, N)


if __name__ == "__main__":
    # Small shapes consistent with the module (scaled-down channels).
    B, C, H, W = 2, 4, 16, 16
    NUM_CAPS, OC, K, STRIDE = 8, 8, 9, 2

    key = jax.random.PRNGKey(0)
    kx, kw, kb = jax.random.split(key, 3)
    x = jax.random.normal(kx, (B, C, H, W), dtype=jnp.float32)
    weights = jax.random.normal(kw, (NUM_CAPS, OC, C, K, K), dtype=jnp.float32) * 0.05
    biases = jax.random.normal(kb, (NUM_CAPS, OC), dtype=jnp.float32) * 0.05

    # row_tile=16 exercises the multi-block pipelined grid even at test size
    # (Pp//TP = 2 also lets v7x's two TensorCores split the row tiles).
    fwd = jax.jit(functools.partial(primary_caps_forward, kernel_size=K,
                                    stride=STRIDE, padding=0, row_tile=16))
    out = jax.block_until_ready(fwd(x, weights, biases))

    ref = jax.block_until_ready(
        primary_caps_reference(x, weights, biases, kernel_size=K,
                               stride=STRIDE, padding=0))

    OH = (H - K) // STRIDE + 1
    OW = (W - K) // STRIDE + 1
    assert out.shape == (B, NUM_CAPS, OC * OH * OW), out.shape
    # Tolerance reflects bf16 MXU inputs / bf16 output vs f32 HIGHEST reference.
    assert jnp.allclose(out, ref, rtol=2e-2, atol=2e-2), \
        float(jnp.max(jnp.abs(out - ref)))

    print("KERNEL_OK")
</pallas_src>

<mosaic_0001>
module attributes {stable_mosaic.version = 11 : i64} {
  func.func @_primary_caps_kernel(%arg0: i32, %arg1: memref<16x384xbf16, #tpu.memory_space<vmem>>, %arg2: memref<384x128xbf16, #tpu.memory_space<vmem>>, %arg3: memref<128x128xbf16, #tpu.memory_space<vmem>>, %arg4: memref<16x128xbf16, #tpu.memory_space<vmem>>) attributes {dimension_semantics = [#tpu.dimension_semantics<parallel>], iteration_bounds = array<i64: 2>, scalar_prefetch = 0 : i64, scratch_operands = 0 : i64, tpu.core_type = #tpu.core_type<tc>, window_params = [{transform_indices = @transform_0, window_bounds = array<i64: 16, 384>}, {pipeline_mode = #tpu.pipeline_mode<synchronous>, transform_indices = @transform_1, window_bounds = array<i64: 384, 128>}, {pipeline_mode = #tpu.pipeline_mode<synchronous>, transform_indices = @transform_2, window_bounds = array<i64: 128, 128>}, {transform_indices = @transform_3, window_bounds = array<i64: 16, 128>}]} {
    %c0 = arith.constant 0 : index
    %c0_0 = arith.constant 0 : index
    %0 = vector.load %arg1[%c0, %c0_0] : memref<16x384xbf16, #tpu.memory_space<vmem>>, vector<16x384xbf16>
    %c0_1 = arith.constant 0 : index
    %c0_2 = arith.constant 0 : index
    %1 = vector.load %arg2[%c0_1, %c0_2] : memref<384x128xbf16, #tpu.memory_space<vmem>>, vector<384x128xbf16>
    %cst = arith.constant dense<0.000000e+00> : vector<16x128xf32>
    %2 = tpu.matmul %0, %1, %cst {dimension_numbers = #tpu.dot_dimension_numbers<[1], [0], [0], [1], [0, 0, 1, 1], [], []>} : vector<16x384xbf16>, vector<384x128xbf16>, vector<16x128xf32> -> vector<16x128xf32>
    %3 = arith.mulf %2, %2 : vector<16x128xf32>
    %4 = arith.truncf %3 : vector<16x128xf32> to vector<16x128xbf16>
    %c0_3 = arith.constant 0 : index
    %c0_4 = arith.constant 0 : index
    %5 = vector.load %arg3[%c0_3, %c0_4] : memref<128x128xbf16, #tpu.memory_space<vmem>>, vector<128x128xbf16>
    %cst_5 = arith.constant dense<0.000000e+00> : vector<16x128xf32>
    %6 = tpu.matmul %4, %5, %cst_5 {dimension_numbers = #tpu.dot_dimension_numbers<[1], [0], [0], [1], [0, 0, 1, 1], [], []>} : vector<16x128xbf16>, vector<128x128xbf16>, vector<16x128xf32> -> vector<16x128xf32>
    %cst_6 = arith.constant 1.000000e+00 : f32
    %7 = vector.broadcast %cst_6 : f32 to vector<16x128xf32>
    %8 = arith.addf %7, %6 : vector<16x128xf32>
    %9 = tpu.reciprocal %8 {approx = true} : vector<16x128xf32> -> vector<16x128xf32>
    %10 = arith.mulf %6, %9 : vector<16x128xf32>
    %cst_7 = arith.constant 9.99999971E-10 : f32
    %11 = vector.broadcast %cst_7 : f32 to vector<16x128xf32>
    %12 = arith.addf %6, %11 : vector<16x128xf32>
    %13 = math.rsqrt %12 : vector<16x128xf32>
    %14 = arith.mulf %10, %13 : vector<16x128xf32>
    %15 = arith.mulf %2, %14 : vector<16x128xf32>
    %16 = arith.truncf %15 : vector<16x128xf32> to vector<16x128xbf16>
    %c0_8 = arith.constant 0 : index
    %c0_9 = arith.constant 0 : index
    %17 = vector.load %arg4[%c0_8, %c0_9] : memref<16x128xbf16, #tpu.memory_space<vmem>>, vector<16x128xbf16>
    tpu.vector_store %arg4[%c0_8, %c0_9], %16 {strides = array<i32>} : memref<16x128xbf16, #tpu.memory_space<vmem>>, vector<16x128xbf16>,
    return
  }
  func.func @transform_0(%arg0: i32) -> (i32, i32) {
    %c0_i32 = arith.constant 0 : i32
    %c0_i32_0 = arith.constant 0 : i32
    return %arg0, %c0_i32 : i32, i32
  }
  func.func @transform_1(%arg0: i32) -> (i32, i32) {
    %c0_i32 = arith.constant 0 : i32
    %c0_i32_0 = arith.constant 0 : i32
    %c0_i32_1 = arith.constant 0 : i32
    return %c0_i32, %c0_i32_0 : i32, i32
  }
  func.func @transform_2(%arg0: i32) -> (i32, i32) {
    %c0_i32 = arith.constant 0 : i32
    %c0_i32_0 = arith.constant 0 : i32
    %c0_i32_1 = arith.constant 0 : i32
    return %c0_i32, %c0_i32_0 : i32, i32
  }
  func.func @transform_3(%arg0: i32) -> (i32, i32) {
    %c0_i32 = arith.constant 0 : i32
    %c0_i32_0 = arith.constant 0 : i32
    return %arg0, %c0_i32 : i32, i32
  }
}

</mosaic_0001>

<bundles_post_ra>
// kernel: primary_caps_forward.1
= control target key start
LH: loop header
LB: loop body
LE: loop exit
PB: predicated region body
PF: predicated region fallthrough
CT: control target
= control target key end

     0   :  { %s880_s12 = smov 0   ;;  %s1017_s0 = inlined_call_operand.vmem [shape: bf16[32,384], index: 0, kind: input, shape index: {}]   ;;  %s1018_s1 = inlined_call_operand.vmem [shape: bf16[384,128], index: 1, kind: input, shape index: {}]   ;;  %s1019_s2 = inlined_call_operand.vmem [shape: bf16[128,128], index: 2, kind: input, shape index: {}]   ;;  %s1020_s3 = inlined_call_operand.vmem [shape: bf16[32,128], index: 3, kind: output, shape index: {}]  }
   0x1 LB: > { %s660_s13 = sadd.s32 4294967295, %s856_s12   ;;  %p664_p0 = scmp.ge.s32.totalorder %s856_s12, 1  ;;  %s856_s12 = sphi %s880_s12, %s13_s12  }
   0x2   : > { %p139_p1 = scmp.lt.s32.totalorder %s856_s12, 3 }
   0x4   : > { %p140_p2 = pnand %p664_p0, %p139_p1 }
   0x5   : > { %s665_s30 = sshll.u32 (!%p140_p2), %s660_s13, 1 }
   0x6   : > { %143 = sbr.rel (%p140_p2) target bundleno = 474 (0x1da), region = 32  ;;  %p165_p3 = scmp.lt.s32.totalorder (!%p140_p2), %s665_s30, 3 }
   0xb   : > { %v806_v0 = vld [vmem:[%s1018_s1 + $0x78] sm:$0xff]   ;;  %v858_v1 = vmov 0.0   ;;  %vm859_vm0 = vmmov 0   ;;  %v809_v4 = vld [vmem:[%s1018_s1 + $0x70] sm:$0xff]   ;;  %v812_v7 = vld [vmem:[%s1018_s1 + $0x68] sm:$0xff]   ;;  %s1022_s30 = smov (!%p165_p3, %s665_s30), 3 }
   0xc   : > { %755 = vmatprep.subr.bf16.mxu1 %v858_v1  ;;  %v807_v2 = vld [vmem:[%s1018_s1 + $0xb8] sm:$0xff]   ;;  %715 = vmatprep.subr.bf16.mxu0 %v806_v0  ;;  %v810_v5 = vld [vmem:[%s1018_s1 + $0xb0] sm:$0xff]   ;;  %v813_v8 = vld [vmem:[%s1018_s1 + $0xa8] sm:$0xff]   ;;  %s795_s21 = smul.u32 12, %s1022_s30 }
   0xd   : > { %v808_v3 = vld [vmem:[%s1018_s1 + $0x38] sm:$0xff]   ;;  %771 = vmatprep.mubr.msk.bf16.mxu1 %vm859_vm0, %v858_v1  ;;  %756 = vmatpush3.bf16.msra.mxu1 %v807_v2  ;;  %v811_v6 = vld [vmem:[%s1018_s1 + $0x30] sm:$0xff]   ;;  %v814_v9 = vld [vmem:[%s1018_s1 + $0x28] sm:$0xff]  }
   0xe   : > { %716 = vmatpush3.bf16.msra.mxu0 %v808_v3  ;;  %757 = vmatprep.subr.bf16.mxu1 %v858_v1  ;;  %v815_v10 = vld [vmem:[%s1018_s1 + $0x60] sm:$0xff]   ;;  %v818_v13 = vld [vmem:[%s1018_s1 + $0x58] sm:$0xff]   ;;  %v821_v16 = vld [vmem:[%s1018_s1 + $0x50] sm:$0xff]   ;;  %s169_s6 = scalar_lea.vmem %s1017_s0, %s795_s21 }
   0xf   : > { %717 = vmatprep.subr.bf16.mxu0 %v809_v4  ;;  %v816_v11 = vld [vmem:[%s1018_s1 + $0xa0] sm:$0xff]   ;;  %v819_v14 = vld [vmem:[%s1018_s1 + $0x98] sm:$0xff]   ;;  %v822_v17 = vld [vmem:[%s1018_s1 + $0x90] sm:$0xff]  }
  0x10   : > { %v817_v12 = vld [vmem:[%s1018_s1 + $0x20] sm:$0xff]   ;;  %v820_v15 = vld [vmem:[%s1018_s1 + $0x18] sm:$0xff]   ;;  %v823_v18 = vld [vmem:[%s1018_s1 + $0x10] sm:$0xff]  }
  0x11   : > { %758 = vmatpush3.bf16.msra.mxu1 %v810_v5  ;;  %v824_v19 = vld [vmem:[%s1018_s1 + $0x48] sm:$0xff]   ;;  %v827_v22 = vld [vmem:[%s1018_s1 + $0x40] sm:$0xff]   ;;  %v834_v28 = vld [vmem:[%s1019_s2 + $0x38] sm:$0xff]  }
  0x12   : > { %718 = vmatpush3.bf16.msra.mxu0 %v811_v6  ;;  %759 = vmatprep.subr.bf16.mxu1 %v858_v1  ;;  %v825_v20 = vld [vmem:[%s1018_s1 + $0x88] sm:$0xff]   ;;  %v832_v23 = vld [vmem:[%s169_s6 + $0x4] ss:$12 sps:$4 sm:$0xff]   ;;  %v838_v32 = vld [vmem:[%s1019_s2 + $0x18] sm:$0xff]  }
  0x13   : > { %719 = vmatprep.subr.bf16.mxu0 %v812_v7  ;;  %v826_v21 = vld [vmem:[%s1018_s1 + $0x8] sm:$0xff]   ;;  %v828_v24 = vld [vmem:[%s1018_s1 + $0x80] sm:$0xff]   ;;  %422 = vmatprep.mubr.bf16.mxu0 %v832_v23  ;;  %v835_v29 = vld [vmem:[%s1019_s2 + $0x30] sm:$0xff]  }
  0x14   : > { %v829_v25 = vld [vmem:[%s1018_s1] sm:$0xff]   ;;  %v833_v27 = vld [vmem:[%s169_s6 + $0x8] ss:$12 sps:$4 sm:$0xff]  }
  0x15   : > { %760 = vmatpush3.bf16.msra.mxu1 %v813_v8  ;;  %v830_v26 = vld [vmem:[%s169_s6] ss:$12 sps:$4 sm:$0xff]   ;;  %v839_v33 = vld [vmem:[%s1019_s2 + $0x10] sm:$0xff]   ;;  %s668_s6 = sshll.u32 %s1022_s30, 2 }
  0x16   : > { %720 = vmatpush3.bf16.msra.mxu0 %v814_v9  ;;  %761 = vmatprep.subr.bf16.mxu1 %v858_v1  ;;  %v836_v30 = vld [vmem:[%s1019_s2 + $0x28] sm:$0xff]   ;;  %v837_v31 = vld [vmem:[%s1019_s2 + $0x20] sm:$0xff]   ;;  %s175_s9 = scalar_lea.vmem %s1020_s3, %s668_s6 }
  0x17   : > { %721 = vmatprep.subr.bf16.mxu0 %v815_v10  ;;  %v840_v34 = vld [vmem:[%s1019_s2 + $0x8] sm:$0xff]   ;;  %v841_v35 = vld [vmem:[%s1019_s2] sm:$0xff]  }
  0x19   : > { %762 = vmatpush3.bf16.msra.mxu1 %v816_v11 }
  0x1a   : > { %722 = vmatpush3.bf16.msra.mxu0 %v817_v12  ;;  %763 = vmatprep.subr.bf16.mxu1 %v858_v1 }
  0x1b   : > { %723 = vmatprep.subr.bf16.mxu0 %v818_v13 }
  0x1d   : > { %764 = vmatpush3.bf16.msra.mxu1 %v819_v14 }
  0x1e   : > { %724 = vmatpush3.bf16.msra.mxu0 %v820_v15  ;;  %765 = vmatprep.subr.bf16.mxu1 %v858_v1 }
  0x1f   : > { %725 = vmatprep.subr.bf16.mxu0 %v821_v16 }
  0x21   : > { %766 = vmatpush3.bf16.msra.mxu1 %v822_v17 }
  0x22   : > { %726 = vmatpush3.bf16.msra.mxu0 %v823_v18  ;;  %767 = vmatprep.subr.bf16.mxu1 %v858_v1 }
  0x23   : > { %727 = vmatprep.subr.bf16.mxu0 %v824_v19 }
  0x25   : > { %768 = vmatpush3.bf16.msra.mxu1 %v825_v20 }
  0x26   : > { %728 = vmatpush3.bf16.msra.mxu0 %v826_v21  ;;  %769 = vmatprep.subr.bf16.mxu1 %v858_v1 }
  0x27   : > { %729 = vmatprep.subr.bf16.mxu0 %v827_v22 }
  0x29   : > { %770 = vmatpush3.bf16.msra.mxu1 %v828_v24 }
  0x2a   : > { %730 = vmatpush3.bf16.msra.mxu0 %v829_v25 }
  0x2b   : > { %775 = vmatprep.subr.bf16.mxu0 %v858_v1 }
  0x2c   : > { %772 = vmatmul.mubr.bf16.vlgmr.msra.gmra.mxu1 %v833_v27 }
  0x2d   : > { %423 = vmatmul.mubr.bf16.vlgmr.msra.gmra.mxu0 %v830_v26 }
  0x2e   : > { %776 = vmatpush3.bf16.msra.mxu0 %v834_v28  ;;  %791 = vmatprep.mubr.msk.bf16.mxu0 %vm859_vm0, %v858_v1 }
  0x2f   : > { %777 = vmatprep.subr.bf16.mxu0 %v858_v1 }
  0x32   : > { %778 = vmatpush3.bf16.msra.mxu0 %v835_v29 }
  0x33   : > { %779 = vmatprep.subr.bf16.mxu0 %v858_v1 }
  0x36   : > { %780 = vmatpush3.bf16.msra.mxu0 %v836_v30 }
  0x37   : > { %781 = vmatprep.subr.bf16.mxu0 %v858_v1 }
  0x3a   : > { %782 = vmatpush3.bf16.msra.mxu0 %v837_v31 }
  0x3b   : > { %783 = vmatprep.subr.bf16.mxu0 %v858_v1 }
  0x3e   : > { %784 = vmatpush3.bf16.msra.mxu0 %v838_v32 }
  0x3f   : > { %785 = vmatprep.subr.bf16.mxu0 %v858_v1 }
  0x42   : > { %786 = vmatpush3.bf16.msra.mxu0 %v839_v33 }
  0x43   : > { %787 = vmatprep.subr.bf16.mxu0 %v858_v1 }
  0x46   : > { %788 = vmatpush3.bf16.msra.mxu0 %v840_v34 }
  0x47   : > { %789 = vmatprep.subr.bf16.mxu0 %v858_v1 }
  0x4a   : > { %790 = vmatpush3.bf16.msra.mxu0 %v841_v35 }
  0xec   : > { %v465_v36 = vpop.f32.mrf.mxu1 }
  0xed   : > { %v731_v37 = vpop.f32.mrf.mxu0 }
  0xee   : > { %v773_v38 = vpop.f32.mrf.mxu1 }
  0xef   : > { %v732_v39 = vpop.f32.mrf.mxu0 }
  0xf0   : > { %v733_v40 = vadd.f32 %v732_v39, %v731_v37  ;;  %v468_v41 = vpop.f32.mrf.mxu1 }
  0xf1   : > { %v734_v42 = vpop.f32.mrf.mxu0 }
  0xf2   : > { %v774_v43 = vpop.f32.mrf.mxu1  ;;  %v466_v45 = vadd.f32 %v733_v40, %v465_v36 }
  0xf3   : > { %v735_v44 = vpop.f32.mrf.mxu0 }
  0xf4   : > { %v736_v46 = vadd.f32 %v735_v44, %v734_v42  ;;  %v472_v48 = vmul.f32 %v466_v45, %v466_v45 }
  0xf6   : > { %v469_v47 = vadd.f32 %v736_v46, %v468_v41 }
  0xf8   : > { %v473_v49 = vmul.f32 %v469_v47, %v469_v47 }
  0xfa   : > { %v474_v50 = vpack.c.bf16 %v473_v49, %v472_v48 }
  0xfc   : > { %792 = vmatmul.mubr.bf16.vlgmr.msra.gmra.mxu0 %v474_v50 }
 0x1bc   : > { %v573_v51 = vpop.f32.mrf.mxu0 }
 0x1bd   : > { %v580_v52 = vadd.f32 1.0, %v573_v51  ;;  %v586_v53 = vadd.f32 1e-09, %v573_v51 }
 0x1be   : > { %v793_v54 = vpop.f32.mrf.mxu0 }
 0x1bf   : > { %842 = vrcp.f32 %v580_v52 }
 0x1c0   : > { %v576_v55 = vpop.f32.mrf.mxu0  ;;  %844 = vrsqrt.f32 %v586_v53 }
 0x1c1   : > { %v581_v56 = vadd.f32 1.0, %v576_v55  ;;  %v587_v57 = vadd.f32 1e-09, %v576_v55 }
 0x1c2   : > { %v794_v58 = vpop.f32.mrf.mxu0 }
 0x1c3   : > { %846 = vrcp.f32 %v581_v56 }
 0x1c4   : > { %848 = vrsqrt.f32 %v587_v57 }
 0x1cc   : > { %v843_v59 = vpop.eup %842 }
 0x1cd   : > { %v584_v60 = vmul.f32 %v843_v59, %v573_v51  ;;  %v845_v61 = vpop.eup %844 }
 0x1cf   : > { %v590_v63 = vmul.f32 %v845_v61, %v584_v60 }
 0x1d0   : > { %v847_v62 = vpop.eup %846 }
 0x1d1   : > { %v585_v0 = vmul.f32 %v847_v62, %v576_v55  ;;  %v849_v1 = vpop.eup %848  ;;  %v592_v3 = vmul.f32 %v590_v63, %v466_v45 }
 0x1d3   : > { %v591_v2 = vmul.f32 %v849_v1, %v585_v0 }
 0x1d5   : > { %v593_v4 = vmul.f32 %v591_v2, %v469_v47 }
 0x1d7   : > { %v713_v5 = vpack.c.bf16 %v593_v4, %v592_v3 }
 0x1d9   : > { %714 = vst [vmem:[%s175_s9] sm:$0xff] %v713_v5  }
 0x1da PF: > { %s13_s12 = sadd.s32 1, %s856_s12  }
 0x1db   : > { %p10_p4 = scmp.ge.s32.totalorder %s13_s12, 4  }
 0x1dd   :  { %12 = sbr.rel (!%p10_p4) target bundleno = 1 (0x1), region = 62 }

</bundles_post_ra>
